<compile_context>
chip_gen: v7x
topology: tpu7x:2x2x1
jax: 0.10.0
libtpu: 0.0.40
codegen_flags: <defaults>
</compile_context>

<pallas_src>
import functools

import jax
import jax.numpy as jnp
from jax import lax
from jax.experimental import pallas as pl
from jax.experimental.pallas import tpu as pltpu


def _cdiv(a, b):
    return -(-a // b)


# ----------------------------- Pallas kernels ------------------------------

def _stats_kernel(x_ref, sum_ref, xxt_ref, *, rem, num_t):
    """Fused raw first + second moments, accumulated in resident out blocks."""
    @pl.when((pl.program_id(0) == 0) & (pl.program_id(1) == 0))
    def _():
        sum_ref[...] = jnp.zeros_like(sum_ref)
        xxt_ref[...] = jnp.zeros_like(xxt_ref)

    xb = x_ref[...]                                     # (C, tile), native dtype
    if rem:
        # Ragged tail: zero out-of-bounds lanes of the last lane-tile so the
        # garbage in the padded edge block cannot corrupt sum / xxt.
        is_last = pl.program_id(1) == (num_t - 1)
        lane = lax.broadcasted_iota(jnp.int32, xb.shape, 1)
        valid = jnp.logical_or(jnp.logical_not(is_last), lane < rem)
        xb = jnp.where(valid, xb, jnp.zeros_like(xb))

    # f32 accumulation for the first moment (VPU/XLU; hidden under HBM DMA).
    sum_ref[...] += jnp.sum(xb.astype(jnp.float32), axis=1, keepdims=True)
    # Second moment: contract on the lane axis of both operands (no transpose),
    # operands stay in X's dtype (bf16-friendly), accumulate in f32.
    xxt_ref[...] += lax.dot_general(
        xb, xb, dimension_numbers=(((1,), (1,)), ((), ())),
        preferred_element_type=jnp.float32)


def _whiten_kernel(bias_ref, wm_ref, x_ref, o_ref):
    """o = wm @ x - (wm @ mean); bias = wm @ mean is precomputed on host."""
    y = jnp.dot(wm_ref[...], x_ref[...], preferred_element_type=jnp.float32)
    o_ref[...] = (y - bias_ref[...]).astype(o_ref.dtype)


# ------------------------------ sizing helpers -------------------------------

def _vmem_capacity_bytes():
    try:
        return int(pltpu.get_tpu_info().vmem_capacity_bytes)
    except Exception:
        return 64 * 1024 * 1024            # conservative fallback (fits v7x)


def _pick_tile(hw, c, itemsize, vmem_cap):
    """Lane tile: ~2 MiB per x block, multiple of 128, within a VMEM budget."""
    if hw < 128:
        return hw                          # full-extent lane dim (exempt rule)
    target_bytes = 2 * 1024 * 1024
    tile = (target_bytes // max(1, c * itemsize)) // 128 * 128
    # Whiten pass holds ~4 double-buffered (C, tile) slabs in X's dtype plus
    # f32 intermediates; keep the total under ~55% of this chip's VMEM.
    budget = max(4 * 1024 * 1024, int(0.55 * vmem_cap)) - 4 * c * c * 4
    per_lane = c * (4 * itemsize + 8)
    tile = min(tile, max(128, (budget // max(1, per_lane)) // 128 * 128))
    tile = max(128, tile)
    return min(tile, hw // 128 * 128)


def _vmem_limit(c, tile, itemsize, vmem_cap):
    need = (4 * c * tile * itemsize        # double-buffered x in/out slabs
            + 2 * c * tile * 4             # f32 matmul intermediates
            + 6 * c * c * 4 + (2 << 20))   # wm / xxt / bias + fudge
    return int(min(int(0.75 * vmem_cap), max(32 * 1024 * 1024, need)))


# ------------------------------ pallas wrappers ------------------------------

def _compute_stats(x3, tile, hw, vmem_cap):
    n_b, c, _ = x3.shape
    itemsize = x3.dtype.itemsize
    t_total = _cdiv(hw, tile)
    m = n_b * hw
    kernel = functools.partial(_stats_kernel, rem=hw % tile, num_t=t_total)
    cost = pl.CostEstimate(
        flops=int(2 * c * c * m + 2 * c * m),
        transcendentals=0,
        bytes_accessed=int(m * c * itemsize + (c * c + c) * 4))
    return pl.pallas_call(
        kernel,
        out_shape=(jax.ShapeDtypeStruct((c, 1), jnp.float32),
                   jax.ShapeDtypeStruct((c, c), jnp.float32)),
        grid_spec=pltpu.PrefetchScalarGridSpec(
            num_scalar_prefetch=0,
            grid=(n_b, t_total),
            in_specs=[pl.BlockSpec((None, c, tile), lambda b, t: (b, 0, t))],
            out_specs=(pl.BlockSpec((c, 1), lambda b, t: (0, 0)),
                       pl.BlockSpec((c, c), lambda b, t: (0, 0)))),
        compiler_params=pltpu.CompilerParams(
            dimension_semantics=("arbitrary", "arbitrary"),
            vmem_limit_bytes=_vmem_limit(c, tile, itemsize, vmem_cap)),
        cost_estimate=cost,
    )(x3)


def _apply_whitening(x3, bias, wm, tile, hw, vmem_cap):
    n_b, c, _ = x3.shape
    itemsize = x3.dtype.itemsize
    t_total = _cdiv(hw, tile)
    m = n_b * hw
    cost = pl.CostEstimate(
        flops=int(2 * c * c * m),
        transcendentals=0,
        bytes_accessed=int(2 * m * c * itemsize + c * c * itemsize + c * 4))
    return pl.pallas_call(
        _whiten_kernel,
        out_shape=jax.ShapeDtypeStruct((n_b, c, hw), x3.dtype),
        grid_spec=pltpu.PrefetchScalarGridSpec(
            num_scalar_prefetch=0,
            grid=(n_b, t_total),
            in_specs=[
                pl.BlockSpec((c, 1), lambda b, t: (0, 0)),            # wm@mean
                pl.BlockSpec((c, c), lambda b, t: (0, 0)),            # wm
                pl.BlockSpec((None, c, tile), lambda b, t: (b, 0, t)),  # x
            ],
            out_specs=pl.BlockSpec((None, c, tile), lambda b, t: (b, 0, t))),
        compiler_params=pltpu.CompilerParams(
            dimension_semantics=("parallel", "parallel"),
            vmem_limit_bytes=_vmem_limit(c, tile, itemsize, vmem_cap)),
        cost_estimate=cost,
    )(bias, wm, x3)


# --------------------------------- forward ----------------------------------

def qr_whitening_single(X, running_mean, running_projection,
                        eps=0.001, momentum=0.1, training=True):
    """Forward pass of QRWhitening_Single on NCHW-like input X.

    Returns (Xn, new_running_mean, new_running_projection).
    """
    n_b, c = int(X.shape[0]), int(X.shape[1])
    hw = 1
    for s in X.shape[2:]:
        hw *= int(s)
    m = n_b * hw

    x3 = X.reshape(n_b, c, hw)            # free reshape: NCHW -> (N, C, HW)

    vmem_cap = _vmem_capacity_bytes()
    tile = _pick_tile(hw, c, x3.dtype.itemsize, vmem_cap)

    if training:
        sums, xxt = _compute_stats(x3, tile, hw, vmem_cap)
        mean = sums / jnp.float32(m)                                 # (C, 1)
        # sigma = eps*I + (1/m)*(x - mean)(x - mean)^T via raw moments.
        # TODO(synk): single-pass covariance (E[xx^T] - mean mean^T) can lose
        # precision / PSD-ness when |mean| >> std; a two-pass or pre-centered
        # variant would be safer for ill-conditioned inputs.
        sigma = (xxt / jnp.float32(m) - mean @ mean.T
                 + jnp.float32(eps) * jnp.eye(c, dtype=jnp.float32))
        L = jnp.linalg.cholesky(sigma)
        wm = jax.scipy.linalg.solve_triangular(
            L, jnp.eye(c, dtype=jnp.float32), lower=True)            # inv(L)
        new_rm = ((1.0 - momentum) * running_mean.astype(jnp.float32)
                  + momentum * mean)
        new_rp = ((1.0 - momentum) * running_projection.astype(jnp.float32)
                  + momentum * wm)
    else:
        mean = running_mean.astype(jnp.float32).reshape(c, 1)
        wm = running_projection.astype(jnp.float32)
        new_rm, new_rp = running_mean, running_projection

    bias = (wm @ mean).astype(jnp.float32)                           # (C, 1)
    wm_x = wm.astype(x3.dtype)     # bf16 MXU operands when X is bf16 (f32 acc)
    xn3 = _apply_whitening(x3, bias, wm_x, tile, hw, vmem_cap)
    return xn3.reshape(X.shape), new_rm, new_rp


# ------------------------------- validation ---------------------------------

def _apply_ref(X, mean, wm):
    c = X.shape[1]
    perm = (1, 0) + tuple(range(2, X.ndim))
    x = jnp.transpose(X, perm).reshape(c, -1)
    xn = wm @ (x - mean)
    return jnp.transpose(xn.reshape((c, X.shape[0]) + tuple(X.shape[2:])), perm)


def _reference_train(X, eps=0.001):
    # Pure-JAX two-pass reference of the training-mode forward.
    c = X.shape[1]
    perm = (1, 0) + tuple(range(2, X.ndim))
    x = jnp.transpose(X, perm).reshape(c, -1)
    m = x.shape[1]
    mean = x.mean(axis=-1, keepdims=True)
    xc = x - mean
    sigma = eps * jnp.eye(c, dtype=jnp.float32) + (xc @ xc.T) / m
    wm = jnp.linalg.inv(jnp.linalg.cholesky(sigma))
    return mean, wm, _apply_ref(X, mean, wm)


if __name__ == "__main__":
    key = jax.random.PRNGKey(0)
    N, C, H, W = 2, 8, 16, 16
    X = jax.random.normal(key, (N, C, H, W), dtype=jnp.float32)

    # Buffer init matching the module's __init__.
    running_mean = jnp.zeros((C, 1), dtype=jnp.float32)
    running_projection = jnp.eye(C, dtype=jnp.float32)

    # ---- training mode ----
    Xn, new_rm, new_rp = qr_whitening_single(
        X, running_mean, running_projection, eps=1e-3, momentum=0.1,
        training=True)
    jax.block_until_ready((Xn, new_rm, new_rp))

    mean_ref, wm_ref, Xn_ref = _reference_train(X, eps=1e-3)
    assert Xn.shape == X.shape and Xn.dtype == X.dtype
    assert jnp.allclose(Xn, Xn_ref, atol=2e-4, rtol=2e-4)
    assert jnp.allclose(new_rm, 0.9 * running_mean + 0.1 * mean_ref,
                        atol=1e-5, rtol=1e-5)
    assert jnp.allclose(new_rp, 0.9 * running_projection + 0.1 * wm_ref,
                        atol=2e-4, rtol=2e-4)

    # ---- eval mode (running buffers only) ----
    Xe, _, _ = qr_whitening_single(
        X, new_rm, new_rp, eps=1e-3, momentum=0.1, training=False)
    jax.block_until_ready(Xe)
    Xe_ref = _apply_ref(X, new_rm, new_rp)
    assert jnp.allclose(Xe, Xe_ref, atol=2e-4, rtol=2e-4)

    # ---- ragged HW tail (300 lanes, not a multiple of the tile) ----
    X2 = jax.random.normal(jax.random.PRNGKey(1), (2, C, 12, 25),
                           dtype=jnp.float32)
    Xn2, _, _ = qr_whitening_single(
        X2, running_mean, running_projection, eps=1e-3, momentum=0.1,
        training=True)
    jax.block_until_ready(Xn2)
    _, _, Xn2_ref = _reference_train(X2, eps=1e-3)
    assert jnp.allclose(Xn2, Xn2_ref, atol=2e-4, rtol=2e-4)

    print("KERNEL_OK")
</pallas_src>

<mosaic_0001>
module attributes {stable_mosaic.version = 11 : i64} {
  func.func @_stats_kernel(%arg0: i32, %arg1: i32, %arg2: memref<1x8x256xf32, #tpu.memory_space<vmem>>, %arg3: memref<8x1xf32, #tpu.memory_space<vmem>>, %arg4: memref<8x8xf32, #tpu.memory_space<vmem>>) attributes {dimension_semantics = [#tpu.dimension_semantics<arbitrary>, #tpu.dimension_semantics<arbitrary>], iteration_bounds = array<i64: 2, 1>, scalar_prefetch = 0 : i64, scratch_operands = 0 : i64, tpu.core_type = #tpu.core_type<tc>, window_params = [{transform_indices = @transform_0, window_bounds = array<i64: 1, 8, 256>}, {pipeline_mode = #tpu.pipeline_mode<synchronous>, transform_indices = @transform_1, window_bounds = array<i64: 8, 1>}, {pipeline_mode = #tpu.pipeline_mode<synchronous>, transform_indices = @transform_2, window_bounds = array<i64: 8, 8>}]} {
    %c0_i32 = arith.constant 0 : i32
    %0 = arith.cmpi eq, %arg0, %c0_i32 : i32
    %c0_i32_0 = arith.constant 0 : i32
    %1 = arith.cmpi eq, %arg1, %c0_i32_0 : i32
    %2 = arith.andi %0, %1 : i1
    %3 = arith.extui %2 : i1 to i32
    %c0_i32_1 = arith.constant 0 : i32
    %4 = arith.cmpi ne, %3, %c0_i32_1 : i32
    scf.if %4 {
      %cst_13 = arith.constant 0.000000e+00 : f32
      %16 = vector.broadcast %cst_13 : f32 to vector<8x1xf32>
      %c0_14 = arith.constant 0 : index
      %c0_15 = arith.constant 0 : index
      %17 = vector.load %arg3[%c0_14, %c0_15] : memref<8x1xf32, #tpu.memory_space<vmem>>, vector<8x1xf32>
      tpu.vector_store %arg3[%c0_14, %c0_15], %16 {strides = array<i32>} : memref<8x1xf32, #tpu.memory_space<vmem>>, vector<8x1xf32>,
      %cst_16 = arith.constant 0.000000e+00 : f32
      %18 = vector.broadcast %cst_16 : f32 to vector<8x8xf32>
      %c0_17 = arith.constant 0 : index
      %c0_18 = arith.constant 0 : index
      %19 = vector.load %arg4[%c0_17, %c0_18] : memref<8x8xf32, #tpu.memory_space<vmem>>, vector<8x8xf32>
      tpu.vector_store %arg4[%c0_17, %c0_18], %18 {strides = array<i32>} : memref<8x8xf32, #tpu.memory_space<vmem>>, vector<8x8xf32>,
    } else {
    }
    %c0 = arith.constant 0 : index
    %c0_2 = arith.constant 0 : index
    %c0_3 = arith.constant 0 : index
    %5 = vector.load %arg2[%c0, %c0_2, %c0_3] : memref<1x8x256xf32, #tpu.memory_space<vmem>>, vector<1x8x256xf32>
    %6 = vector.shape_cast %5 : vector<1x8x256xf32> to vector<8x256xf32>
    %c0_4 = arith.constant 0 : index
    %c0_5 = arith.constant 0 : index
    %7 = vector.load %arg3[%c0_4, %c0_5] : memref<8x1xf32, #tpu.memory_space<vmem>>, vector<8x1xf32>
    %cst = arith.constant dense<0.000000e+00> : vector<8xf32>
    %8 = vector.multi_reduction <add>, %6, %cst [1] : vector<8x256xf32> to vector<8xf32>
    %9 = vector.shape_cast %8 : vector<8xf32> to vector<8x1xf32>
    %10 = arith.addf %7, %9 : vector<8x1xf32>
    %c0_6 = arith.constant 0 : index
    %c0_7 = arith.constant 0 : index
    %11 = vector.load %arg3[%c0_6, %c0_7] : memref<8x1xf32, #tpu.memory_space<vmem>>, vector<8x1xf32>
    tpu.vector_store %arg3[%c0_6, %c0_7], %10 {strides = array<i32>} : memref<8x1xf32, #tpu.memory_space<vmem>>, vector<8x1xf32>,
    %c0_8 = arith.constant 0 : index
    %c0_9 = arith.constant 0 : index
    %12 = vector.load %arg4[%c0_8, %c0_9] : memref<8x8xf32, #tpu.memory_space<vmem>>, vector<8x8xf32>
    %cst_10 = arith.constant dense<0.000000e+00> : vector<8x8xf32>
    %13 = tpu.matmul %6, %6, %cst_10 {dimension_numbers = #tpu.dot_dimension_numbers<[1], [1], [0], [0], [0, 0, 1, 0], [], []>} : vector<8x256xf32>, vector<8x256xf32>, vector<8x8xf32> -> vector<8x8xf32>
    %14 = arith.addf %12, %13 : vector<8x8xf32>
    %c0_11 = arith.constant 0 : index
    %c0_12 = arith.constant 0 : index
    %15 = vector.load %arg4[%c0_11, %c0_12] : memref<8x8xf32, #tpu.memory_space<vmem>>, vector<8x8xf32>
    tpu.vector_store %arg4[%c0_11, %c0_12], %14 {strides = array<i32>} : memref<8x8xf32, #tpu.memory_space<vmem>>, vector<8x8xf32>,
    return
  }
  func.func @transform_0(%arg0: i32, %arg1: i32) -> (i32, i32, i32) {
    %c0_i32 = arith.constant 0 : i32
    %c0_i32_0 = arith.constant 0 : i32
    return %arg0, %c0_i32, %arg1 : i32, i32, i32
  }
  func.func @transform_1(%arg0: i32, %arg1: i32) -> (i32, i32) {
    %c0_i32 = arith.constant 0 : i32
    %c0_i32_0 = arith.constant 0 : i32
    %c0_i32_1 = arith.constant 0 : i32
    return %c0_i32, %c0_i32_0 : i32, i32
  }
  func.func @transform_2(%arg0: i32, %arg1: i32) -> (i32, i32) {
    %c0_i32 = arith.constant 0 : i32
    %c0_i32_0 = arith.constant 0 : i32
    %c0_i32_1 = arith.constant 0 : i32
    return %c0_i32, %c0_i32_0 : i32, i32
  }
}

</mosaic_0001>

<bundles_post_ra>
// kernel: tpu_custom_call.1
= control target key start
LH: loop header
LB: loop body
LE: loop exit
PB: predicated region body
PF: predicated region fallthrough
CT: control target
= control target key end

     0   :  { %8 = vsyncpa [#allocation3], 0  ;;  %s699_s0 = inlined_call_operand.hbm [shape: f32[2,8,256], index: 0, kind: input, shape index: {}]   ;;  %s700_s1 = inlined_call_operand.vmem [shape: f32[8,1], index: 1, kind: output, shape index: {0}]   ;;  %s701_s2 = inlined_call_operand.hbm [shape: f32[8,8], index: 2, kind: output, shape index: {1}]  }
   0x1   :  { %10 = vsyncpa [#allocation3 + $0x1], 0 }
   0x2   :  { %11 = vsyncpa [#allocation4], 0  ;;  %s539_s9 = smov 0   ;;  %s541_s10 = smov 0  }
   0x3   :  { %s543_s11 = smov 0   ;;  %s545_s12 = smov 0  }
   0x4   :  { %s547_s13 = smov 0   ;;  %s549_s14 = smov 0  }
   0x5 LB: > { %s331_s15 = sadd.s32 4294967295, %s519_s14   ;;  %s29_s16 = sadd.s32 1, %s515_s13  ;;  %s519_s14 = sphi %s549_s14, %s17_s14   ;;  %s515_s13 = sphi %s547_s13, %s712_s13   ;;  %s511_s12 = sphi %s545_s12, %s711_s12   ;;  %s507_s11 = sphi %s543_s11, %s710_s11   ;;  %s503_s10 = sphi %s541_s10, %s709_s10   ;;  %s499_s9 = sphi %s539_s9, %s708_s9  }
   0x6   : > { %p31_p0 = scmp.ge.s32.totalorder %s29_s16, 2  ;;  %s38_s17 = sadd.s32 1, %s507_s11 }
   0x7   : > { %p45_p1 = scmp.ne.s32.totalorder %s507_s11, %s503_s10  ;;  %p46_p2 = scmp.eq.s32.totalorder %s519_s14, 0 }
   0x8   : > { %s714_s16 = smov (%p31_p0, %s29_s16), 0  ;;  %p51_p4 = scmp.ne.s32.totalorder %s503_s10, %s499_s9 }
   0x9   : > { %p575_p3 = por %p46_p2, %p45_p1  ;;  %s33_s19 = ssub.s32 %s515_s13, %s714_s16 }
   0xa   : > { %p52_p5 = scmp.eq.s32.totalorder %s331_s15, 0  ;;  %p36_p6 = scmp.eq.s32.totalorder %s33_s19, 0 }
   0xb   : > { %p356_p8 = scmp.lt.s32.totalorder %s519_s14, 2  ;;  %s117_s22 = sand.u32 1, %s507_s11  }
   0xc   : > { %p584_p7 = por %p52_p5, %p51_p4  ;;  %s344_s23 = sshll.u32 %s515_s13, 8 }
   0xd   : > { %s590_s21 = scalar_select %p36_p6, %s507_s11, %s38_s17  }
   0xe   : > { %s334_s24 = sshll.u32 %s117_s22, 4  ;;  %s597_s27 = scalar_lea.hbm %s699_s0, %s344_s23 }
   0xf   : > { %s121_s28 = scalar_lea.vmem [#allocation2], %s334_s24  ;;  %p601_p9 = pnand %p356_p8, %p575_p3 }
  0x10   : > { %s131_s29 = sshll.u32 %s121_s28, 4  ;;  %s118_s3 = scalar_lea.sflag [#allocation3], %s117_s22  ;;  %s605_s29 = int_to_ptr.vmem [resolvable:$true] %s131_s29 }
  0x11   : > { %s409_s4 = scalar_lea.hbm %s597_s27, 256  ;;  %p411_p13 = pneg %p601_p9 }
  0x12   : > { %p410_p12 = scmp.ne.s32.totalorder %s597_s27, %s409_s4  ;;  %s414_s7 = scalar_lea.hbm %s699_s0, 512 }
  0x13   : > { %p415_p2 = scmp.lt.u32.totalorder %s597_s27, %s699_s0  ;;  %p416_p3 = scmp.lt.u32.totalorder %s414_s7, %s409_s4 }
  0x14   : > { %p412_p0 = pnand %p411_p13, %p410_p12  ;;  %p418_p5 = scmp.lt.u32.totalorder %s409_s4, %s597_s27 }
  0x15   : > { %p417_p4 = por %p416_p3, %p415_p2 }
  0x16   : > { %p413_p1 = pneg %p412_p0 }
  0x17   : > { %p419_p6 = por %p418_p5, %p417_p4 }
  0x19   : > { %p420_p8 = pnand %p419_p6, %p413_p1 }
  0x1b   : > { %423 = shalt.err (!%p420_p8)
}
  0x1c   : > { %s424_s17 = scalar_lea.vmem %s605_s29, 256  ;;  %s521_s18 = smov [#allocation2]  }
  0x1d   : > { %p425_p12 = scmp.ne.s32.totalorder %s605_s29, %s424_s17  ;;  %s429_s19 = sshll.u32 %s521_s18, 4  ;;  %s430_s19 = int_to_ptr.vmem [resolvable:$false] %s429_s19 }
  0x1e   : > { %s431_s22 = scalar_lea.vmem %s430_s19, 512  ;;  %p432_p11 = scmp.lt.s32.totalorder %s605_s29, %s430_s19 }
  0x1f   : > { %p427_p0 = pnand %p425_p12, %p411_p13  ;;  %p433_p2 = scmp.lt.s32.totalorder %s431_s22, %s424_s17 }
  0x21   : > { %p428_p10 = pneg %p427_p0  ;;  %p434_p3 = por %p433_p2, %p432_p11 }
  0x23   : > { %p435_p4 = pnand %p434_p3, %p428_p10 }
  0x25   : > { %438 = shalt.err (!%p435_p4)
}
  0x26   : > { %355 = dma.hbm_to_vmem [thread:$0]  (!%p601_p9), %s597_s27, 256, %s605_s29, %s118_s3  }
  0x27   : > { %p705_p1 = scmp.lt.s32.totalorder %s519_s14, 3  ;;  %p706_p5 = scmp.ge.s32.totalorder %s519_s14, 1 }
  0x29   : > { %p137_p13 = pnand %p706_p5, %p705_p1 }
  0x2a   : > { %s142_s23 = sand.u32 (!%p137_p13), 1, %s503_s10  }
  0x2b   : > { %140 = sbr.rel (%p137_p13) target bundleno = 294 (0x126), region = 24  ;;  %s338_s24 = sshll.u32 (!%p137_p13), %s142_s23, 4 }
  0x2c   : > { %s143_s25 = scalar_lea.sflag (!%p137_p13), [#allocation3], %s142_s23  ;;  %s146_s26 = scalar_lea.vmem (!%p137_p13), [#allocation2], %s338_s24 }
  0x32   : > { %490 = dma.done.wait (%p584_p7), %s143_s25, 256  }
  0x33   : > { %492 = vsyncadd (%p584_p7), %s143_s25, 4294967040  ;;  %p163_p10 = scmp.eq.s32.totalorder %s511_s12, 0 }
  0x34   : > { %vm169_vm0 = vcmask (%p163_p10), 7168   ;;  %vm171_vm1 = vcmask (%p163_p10), 64512   ;;  %v522_v0 = vmov (%p163_p10), 0.0  }
  0x35   : > { %168 = sbr.rel (!%p163_p10) target bundleno = 60 (0x3c), region = 32  ;;  %170 = vst.msk [vmem:[%s700_s1] sm:$0xff] (%p163_p10), %vm169_vm0, %v522_v0 }
  0x36   : > { %172 = vst.msk [vmem:[#allocation5] sm:$0xff] (%p163_p10), %vm171_vm1, %v522_v0 }
  0x3c PF: > { %v174_v1 = vld [vmem:[%s146_s26 + $0x8] sm:$0xff]  ;;  %v173_v2 = vld [vmem:[%s146_s26] sm:$0xff]  ;;  %vm180_vm2 = vcmask 7168   ;;  %s523_s3 = smov [#allocation5]   ;;  %vm254_vm3 = vcmask 64512   ;;  %p655_p7 = scmp.eq.s32.totalorder %s331_s15, 1 }
  0x3d   : > { %183 = vmatprep.subr.mxu0 %v174_v1  ;;  %247 = vmatprep.mubr.f32.mxu0 %v174_v1  ;;  %v176_v3 = vadd.f32 %v174_v1, %v173_v2  ;;  %v175_v4 = vld [vmem:[%s700_s1] sm:$0xff]  ;;  %s266_s4 = sshll.u32 %s523_s3, 4  ;;  %s267_s4 = int_to_ptr.vmem [resolvable:$true] %s266_s4 }
  0x3e   : > { %184 = vmatpush1.xpose.msra.mxu0 %v173_v2  ;;  %v182_v7 = vld [vmem:[#allocation5] sm:$0xff]  ;;  %s439_s6 = scalar_lea.vmem %s267_s4, 128  ;;  %p446_p8 = scmp.lt.s32.totalorder %s267_s4, %s267_s4 }
  0x3f   : > { %177 = vadd.xlane.f32.xlu0 %v176_v3  ;;  %p440_p9 = scmp.ne.s32.totalorder %s267_s4, %s439_s6  ;;  %p447_p12 = scmp.lt.s32.totalorder %s439_s6, %s439_s6 }
  0x41   : > { %248 = vmatmul.mubr.f32.vlgmr.msra.gmra.mrb[0].mxu0 %v173_v2  ;;  %p441_p11 = pnand %p440_p9, %p655_p7  ;;  %p448_p0 = por %p447_p12, %p446_p8 }
  0x43   : > { %p442_p6 = pneg %p441_p11 }
  0x45   : > { %p449_p2 = pnand %p448_p0, %p442_p6 }
  0xcc   : > { %v178_v5 = vpop.xlane.xlu0 %177 }
  0xcd   : > { %v179_v6 = vadd.f32 %v178_v5, %v175_v4 }
  0xcf   : > { %181 = vst.msk [vmem:[%s700_s1] sm:$0xff] %vm180_vm2, %v179_v6 }
 0x114   : > { %v249_v8 = vpop.f32.mrb[0].mxu0 }
 0x115   : > { %v253_v9 = vadd.f32 %v249_v8, %v182_v7  ;;  %v251_v10 = vpop.f32.mrb[1].mxu0 }
 0x117   : > { %255 = vst.msk [vmem:[#allocation5] sm:$0xff] %vm254_vm3, %v253_v9 }
 0x118   : > { %452 = shalt.err (!%p449_p2)
}
 0x119   : > { %s453_s8 = scalar_lea.hbm %s701_s2, 128 }
 0x11a   : > { %p454_p3 = scmp.ne.s32.totalorder %s701_s2, %s453_s8  ;;  %p459_p5 = scmp.lt.u32.totalorder %s453_s8, %s701_s2 }
 0x11c   : > { %p455_p4 = pnand %p454_p3, %p655_p7 }
 0x11e   : > { %p456_p1 = pneg %p455_p4 }
 0x120   : > { %p461_p13 = pnand %p459_p5, %p456_p1 }
 0x122   : > { %464 = shalt.err (!%p461_p13)
}
 0x123   : > { %349 = dma.vmem_to_hbm [thread:$0]  (%p655_p7), %s267_s4, 128, %s701_s2, [#allocation4]  }
 0x124   : > { %494 = dma.done.wait (%p655_p7), [#allocation4], 128  }
 0x125   : > { %496 = vsyncadd (%p655_p7), [#allocation4], 4294967168 }
 0x126 PF: > { %s17_s14 = sadd.s32 1, %s519_s14   ;;  %s708_s9 = smov %s503_s10 }
 0x127   : > { %p14_p10 = scmp.ge.s32.totalorder %s17_s14, 4   ;;  %s709_s10 = smov %s507_s11 }
 0x128   : > { %s710_s11 = smov %s590_s21  ;;  %s711_s12 = smov %s515_s13 }
 0x129   : > { %s712_s13 = smov %s714_s16  ;;  %16 = sbr.rel (!%p14_p10) target bundleno = 5 (0x5), region = 73 }
 0x130   :  { %282 = vsyncpa [#allocation3], 1 }
 0x131   :  { %284 = vsyncpa [#allocation3 + $0x1], 1 }
 0x132   :  { %285 = vsyncpa [#allocation4], 1 }
 0x133   :  { %287 = vsyncpa [#allocation4 + $0x1], 1 }

</bundles_post_ra>
